<compile_context>
chip_gen: v7x
topology: tpu7x:2x2x1
jax: 0.10.0
libtpu: 0.0.40
codegen_flags: <defaults>
</compile_context>

<pallas_src>
import functools
import math

import jax
import jax.numpy as jnp
from jax import lax
from jax.experimental import pallas as pl
from jax.experimental.pallas import tpu as pltpu

NUM_GROUPS = 8
EPS = 1e-6
NEG_INF = -1e30


def _round_up(n, m):
    return ((n + m - 1) // m) * m


def _vmem_limit_bytes(frac=0.6, fallback=32 * 1024 * 1024):
    # Per-generation VMEM budget: ~76 MiB on 128 MiB parts (v5e/v6e),
    # ~38 MiB on 64 MiB parts (v7x).  Falls back to a universally-safe value.
    try:
        cap = pltpu.get_tpu_info().vmem_capacity_bytes
        return int(cap * frac)
    except Exception:
        return fallback


# ----------------------------------------------------------------------------
# Kernel 1: GroupNorm statistics -> per-channel scale / shift
# ----------------------------------------------------------------------------
def gn_stats_kernel(x_ref, gmat_ref, gamma_ref, beta_ref, scale_ref, shift_ref):
    x = x_ref[0]                                   # (C, L) f32, full (unpadded) length
    C, L = x.shape
    gmat = gmat_ref[...]                           # (G, C) one-hot group membership
    inv_cnt = 1.0 / float((C // NUM_GROUPS) * L)   # compile-time constant

    # group means
    sum_c = jnp.sum(x, axis=1, keepdims=True)                                    # (C, 1)
    mean_g = jnp.dot(gmat, sum_c, preferred_element_type=jnp.float32) * inv_cnt  # (G, 1)
    mean_c = jnp.dot(gmat.T, mean_g, preferred_element_type=jnp.float32)         # (C, 1)

    # two-pass (centered) variance
    d = x - mean_c
    ssq_c = jnp.sum(d * d, axis=1, keepdims=True)                                # (C, 1)
    var_g = jnp.dot(gmat, ssq_c, preferred_element_type=jnp.float32) * inv_cnt   # (G, 1)
    rstd_c = lax.rsqrt(jnp.dot(gmat.T, var_g,
                               preferred_element_type=jnp.float32) + EPS)        # (C, 1)

    scale = gamma_ref[...] * rstd_c                # gamma * rstd
    shift = beta_ref[...] - scale * mean_c         # beta - gamma * rstd * mean
    scale_ref[0] = scale
    shift_ref[0] = shift


# ----------------------------------------------------------------------------
# Kernel 2: GN-apply + fused QKV projection prepass (once per position)
#   Q -> (B, L, C) bf16 with bias and C**-0.5 folded in
#   K -> (B, C, L) bf16 with bias folded in
#   V -> (B, L, C) bf16 with bias folded in
# ----------------------------------------------------------------------------
def gn_qkv_kernel(x_ref, scale_ref, shift_ref, w_ref, b_ref,
                  q_ref, k_ref, v_ref, *, attn_scale):
    C = x_ref.shape[1]
    h = (x_ref[0] * scale_ref[0] + shift_ref[0]).astype(jnp.bfloat16)     # (C, TL)
    qkv = jnp.dot(w_ref[...], h, preferred_element_type=jnp.float32)      # (3C, TL) f32
    qkv = qkv + b_ref[...]                                                # biases folded
    k_ref[0] = qkv[C:2 * C].astype(jnp.bfloat16)                          # (C, TL)
    # Q / V stored (TL, C) so the flash-kernel matmuls are canonical MXU shapes;
    # the transposes happen once per position here, not once per kv-step.
    q_ref[0] = (qkv[0:C] * attn_scale).T.astype(jnp.bfloat16)             # (TL, C)
    v_ref[0] = qkv[2 * C:3 * C].T.astype(jnp.bfloat16)                    # (TL, C)


# ----------------------------------------------------------------------------
# Kernel 3: flash-style attention + proj_out + residual
# grid = (B, n_q_tiles, n_kv_tiles), kv axis innermost ("arbitrary")
# ----------------------------------------------------------------------------
def attn_flash_kernel(q_ref, k_ref, v_ref, xres_ref, wp_ref, bp_ref,
                      out_ref, m_sc, l_sc, acc_sc, *, L_real, L_padded):
    ki = pl.program_id(2)
    n_kv = pl.num_programs(2)

    @pl.when(ki == 0)
    def _init():
        m_sc[...] = jnp.full_like(m_sc, NEG_INF)
        l_sc[...] = jnp.zeros_like(l_sc)
        acc_sc[...] = jnp.zeros_like(acc_sc)

    q = q_ref[0]                                                          # (TQ, C) bf16
    k = k_ref[0]                                                          # (C, TK) bf16
    v = v_ref[0]                                                          # (TK, C) bf16

    # scores: canonical (TQ, C) @ (C, TK) -> no transposes in the hot loop
    s = jnp.dot(q, k, preferred_element_type=jnp.float32)                 # (TQ, TK) f32

    if L_real != L_padded:  # static: mask padded key positions (lane-row iota only)
        tk = s.shape[1]
        key_pos = ki * tk + lax.broadcasted_iota(jnp.int32, (1, tk), 1)   # (1, TK)
        s = jnp.where(key_pos < L_real, s, jnp.float32(NEG_INF))

    # online softmax (f32 statistics)
    m_prev = m_sc[...]
    m_new = jnp.maximum(m_prev, jnp.max(s, axis=-1, keepdims=True))
    alpha = jnp.exp(m_prev - m_new)
    p = jnp.exp(s - m_new)                                                # (TQ, TK) f32
    l_sc[...] = alpha * l_sc[...] + jnp.sum(p, axis=-1, keepdims=True)
    # canonical (TQ, TK) @ (TK, C)
    acc_sc[...] = alpha * acc_sc[...] + jnp.dot(p.astype(jnp.bfloat16), v,
                                                preferred_element_type=jnp.float32)
    m_sc[...] = m_new

    @pl.when(ki == n_kv - 1)
    def _finalize():
        inv_l = pl.reciprocal(l_sc[...], approx=True)                     # (TQ, 1)
        h_attn = (acc_sc[...] * inv_l).astype(jnp.bfloat16)               # (TQ, C)
        # proj_out (once per q tile): contract channel dim -> (C, TQ)
        o = lax.dot_general(wp_ref[...], h_attn, (((1,), (1,)), ((), ())),
                            preferred_element_type=jnp.float32)
        # fused bias + residual: single store per output tile
        out_ref[0] = xres_ref[0] + o + bp_ref[...]


# ----------------------------------------------------------------------------
# Wrapper
# ----------------------------------------------------------------------------
def attn_block(x, params, *, tq=256, tk=512):
    B, C, L = x.shape
    G = NUM_GROUPS
    vmem_limit = _vmem_limit_bytes()

    # --- 1. GroupNorm statistics on the unpadded input (grid over batch) ---
    # For extremely long L this pass would itself be L-tiled with carried
    # sums; at typical UNet C*L one (C, L) block fits the scoped VMEM budget.
    scale_c, shift_c = pl.pallas_call(
        gn_stats_kernel,
        out_shape=(jax.ShapeDtypeStruct((B, C, 1), jnp.float32),
                   jax.ShapeDtypeStruct((B, C, 1), jnp.float32)),
        grid=(B,),
        in_specs=[
            pl.BlockSpec((1, C, L), lambda b: (b, 0, 0)),
            pl.BlockSpec((G, C), lambda b: (0, 0)),
            pl.BlockSpec((C, 1), lambda b: (0, 0)),
            pl.BlockSpec((C, 1), lambda b: (0, 0)),
        ],
        out_specs=(pl.BlockSpec((1, C, 1), lambda b: (b, 0, 0)),
                   pl.BlockSpec((1, C, 1), lambda b: (b, 0, 0))),
        compiler_params=pltpu.CompilerParams(
            dimension_semantics=("parallel",),
            vmem_limit_bytes=vmem_limit),
    )(x, params["gmat"], params["gamma"], params["beta"])

    # --- tiling: decoupled TQ / TK, lane-dense padded L ---
    l128 = _round_up(L, 128)
    TQ = min(tq, l128)
    TK = min(tk, l128)
    L_pad = _round_up(L, math.lcm(TQ, TK))
    x_p = x if L_pad == L else jnp.pad(x, ((0, 0), (0, 0), (0, L_pad - L)))
    n_q = L_pad // TQ
    n_kv = L_pad // TK

    # --- 2. GN-apply + fused QKV projection prepass (once per position) ---
    TP = TK
    n_p = L_pad // TP
    q_all, k_all, v_all = pl.pallas_call(
        functools.partial(gn_qkv_kernel, attn_scale=float(C) ** -0.5),
        out_shape=(jax.ShapeDtypeStruct((B, L_pad, C), jnp.bfloat16),
                   jax.ShapeDtypeStruct((B, C, L_pad), jnp.bfloat16),
                   jax.ShapeDtypeStruct((B, L_pad, C), jnp.bfloat16)),
        grid=(B, n_p),
        in_specs=[
            pl.BlockSpec((1, C, TP), lambda b, l: (b, 0, l)),   # x tile
            pl.BlockSpec((1, C, 1), lambda b, l: (b, 0, 0)),    # GN scale
            pl.BlockSpec((1, C, 1), lambda b, l: (b, 0, 0)),    # GN shift
            pl.BlockSpec((3 * C, C), lambda b, l: (0, 0)),      # stacked Wq/Wk/Wv (bf16)
            pl.BlockSpec((3 * C, 1), lambda b, l: (0, 0)),      # stacked biases (f32)
        ],
        out_specs=(pl.BlockSpec((1, TP, C), lambda b, l: (b, l, 0)),   # Q
                   pl.BlockSpec((1, C, TP), lambda b, l: (b, 0, l)),   # K
                   pl.BlockSpec((1, TP, C), lambda b, l: (b, l, 0))),  # V
        compiler_params=pltpu.CompilerParams(
            dimension_semantics=("parallel", "parallel"),
            vmem_limit_bytes=vmem_limit),
    )(x_p, scale_c, shift_c, params["w_qkv"], params["b_qkv"])

    # --- 3. Flash attention + proj_out + residual ---
    kernel = functools.partial(attn_flash_kernel, L_real=L, L_padded=L_pad)
    # NOTE: if a trace shows exposed DMA waits on the K/V streams (most likely
    # on v5e's lower HBM bandwidth), add pipeline_mode=pl.Buffered(3) to the
    # K and V BlockSpecs below.
    out_p = pl.pallas_call(
        kernel,
        out_shape=jax.ShapeDtypeStruct((B, C, L_pad), jnp.float32),
        grid=(B, n_q, n_kv),
        in_specs=[
            pl.BlockSpec((1, TQ, C), lambda b, qi, ki: (b, qi, 0)),   # Q tile (TQ, C)
            pl.BlockSpec((1, C, TK), lambda b, qi, ki: (b, 0, ki)),   # K tile (C, TK)
            pl.BlockSpec((1, TK, C), lambda b, qi, ki: (b, ki, 0)),   # V tile (TK, C)
            pl.BlockSpec((1, C, TQ), lambda b, qi, ki: (b, 0, qi)),   # x residual tile
            pl.BlockSpec((C, C), lambda b, qi, ki: (0, 0)),           # W_proj (bf16)
            pl.BlockSpec((C, 1), lambda b, qi, ki: (0, 0)),           # b_proj (f32)
        ],
        out_specs=pl.BlockSpec((1, C, TQ), lambda b, qi, ki: (b, 0, qi)),
        scratch_shapes=[
            pltpu.VMEM((TQ, 1), jnp.float32),     # running row max m
            pltpu.VMEM((TQ, 1), jnp.float32),     # running denominator l
            pltpu.VMEM((TQ, C), jnp.float32),     # output accumulator
        ],
        compiler_params=pltpu.CompilerParams(
            # qi stays "parallel" safely: K/V come from the HBM prepass, so no
            # per-q-tile VMEM cache-fill is assumed (v7x 2-TC sharding is safe).
            dimension_semantics=("parallel", "parallel", "arbitrary"),
            vmem_limit_bytes=vmem_limit),
    )(q_all, k_all, v_all, x_p, params["w_proj"], params["b_proj"])

    return out_p if L_pad == L else out_p[:, :, :L]


# ----------------------------------------------------------------------------
# Parameters / pure-JAX reference
# ----------------------------------------------------------------------------
def make_params(key, C):
    G = NUM_GROUPS
    ks = jax.random.split(key, 10)
    gidx = jnp.arange(C) // (C // G)
    gmat = (gidx[None, :] == jnp.arange(G)[:, None]).astype(jnp.float32)
    p = {
        "gmat": gmat,
        "gamma": (1.0 + 0.1 * jax.random.normal(ks[0], (C, 1))).astype(jnp.float32),
        "beta": (0.1 * jax.random.normal(ks[1], (C, 1))).astype(jnp.float32),
        "wq": (0.1 * jax.random.normal(ks[2], (C, C))).astype(jnp.float32),
        "bq": (0.1 * jax.random.normal(ks[3], (C, 1))).astype(jnp.float32),
        "wk": (0.1 * jax.random.normal(ks[4], (C, C))).astype(jnp.float32),
        "bk": (0.1 * jax.random.normal(ks[5], (C, 1))).astype(jnp.float32),
        "wv": (0.1 * jax.random.normal(ks[6], (C, C))).astype(jnp.float32),
        "bv": (0.1 * jax.random.normal(ks[7], (C, 1))).astype(jnp.float32),
        "wp": (0.1 * jax.random.normal(ks[8], (C, C))).astype(jnp.float32),
        "bp": (0.1 * jax.random.normal(ks[9], (C, 1))).astype(jnp.float32),
    }
    # consolidated kernel operands: one stacked (3C, C) bf16 QKV weight,
    # stacked f32 biases, bf16 proj weight
    p["w_qkv"] = jnp.concatenate([p["wq"], p["wk"], p["wv"]], axis=0).astype(jnp.bfloat16)
    p["b_qkv"] = jnp.concatenate([p["bq"], p["bk"], p["bv"]], axis=0)
    p["w_proj"] = p["wp"].astype(jnp.bfloat16)
    p["b_proj"] = p["bp"]
    return p


def reference(x, p):
    # pure-JAX f32 reference matching the PyTorch forward exactly
    B, C, L = x.shape
    G = NUM_GROUPS
    xr = x.reshape(B, G, C // G, L)
    mean = xr.mean(axis=(2, 3), keepdims=True)
    var = xr.var(axis=(2, 3), keepdims=True)
    h = (xr - mean) / jnp.sqrt(var + EPS)
    h = h.reshape(B, C, L) * p["gamma"].reshape(1, C, 1) + p["beta"].reshape(1, C, 1)
    q = jnp.einsum("oc,bcl->bol", p["wq"], h) + p["bq"].reshape(1, C, 1)
    k = jnp.einsum("oc,bcl->bol", p["wk"], h) + p["bk"].reshape(1, C, 1)
    v = jnp.einsum("oc,bcl->bol", p["wv"], h) + p["bv"].reshape(1, C, 1)
    w = jnp.einsum("bci,bcj->bij", q, k) * (float(C) ** -0.5)
    w = jax.nn.softmax(w, axis=2)
    h_attn = jnp.einsum("bcj,bij->bci", v, w)
    out = jnp.einsum("oc,bcl->bol", p["wp"], h_attn) + p["bp"].reshape(1, C, 1)
    return x + out


if __name__ == "__main__":
    # C divisible by 8 groups; L not a multiple of 128 so padding + key masking
    # is exercised.  Run once with the default (large, 256-multiple) tiles and
    # once with small tiles to exercise the multi-tile online-softmax path.
    B, C, L = 2, 32, 200
    key = jax.random.PRNGKey(0)
    kx, kp = jax.random.split(key)
    x = jax.random.normal(kx, (B, C, L), dtype=jnp.float32)
    params = make_params(kp, C)

    y_ref = reference(x, params)

    y1 = jax.block_until_ready(attn_block(x, params))                     # single kv tile
    y2 = jax.block_until_ready(attn_block(x, params, tq=128, tk=128))     # multi kv tile

    # bf16 MXU inputs + approx reciprocal vs. a pure-f32 reference -> relaxed
    # tolerance (errors observed are O(1e-3) on O(1) outputs).
    err1 = float(jnp.max(jnp.abs(y1 - y_ref)))
    err2 = float(jnp.max(jnp.abs(y2 - y_ref)))
    assert jnp.allclose(y1, y_ref, atol=2e-2, rtol=2e-2), err1
    assert jnp.allclose(y2, y_ref, atol=2e-2, rtol=2e-2), err2
    print("KERNEL_OK")
</pallas_src>

<mosaic_0001>
module attributes {stable_mosaic.version = 11 : i64} {
  func.func @gn_stats_kernel(%arg0: i32, %arg1: memref<1x32x200xf32, #tpu.memory_space<vmem>>, %arg2: memref<8x32xf32, #tpu.memory_space<vmem>>, %arg3: memref<32x1xf32, #tpu.memory_space<vmem>>, %arg4: memref<32x1xf32, #tpu.memory_space<vmem>>, %arg5: memref<1x32x1xf32, #tpu.memory_space<vmem>>, %arg6: memref<1x32x1xf32, #tpu.memory_space<vmem>>) attributes {dimension_semantics = [#tpu.dimension_semantics<parallel>], iteration_bounds = array<i64: 2>, scalar_prefetch = 0 : i64, scratch_operands = 0 : i64, tpu.core_type = #tpu.core_type<tc>, window_params = [{transform_indices = @transform_0, window_bounds = array<i64: 1, 32, 200>}, {pipeline_mode = #tpu.pipeline_mode<synchronous>, transform_indices = @transform_1, window_bounds = array<i64: 8, 32>}, {pipeline_mode = #tpu.pipeline_mode<synchronous>, transform_indices = @transform_2, window_bounds = array<i64: 32, 1>}, {pipeline_mode = #tpu.pipeline_mode<synchronous>, transform_indices = @transform_3, window_bounds = array<i64: 32, 1>}, {transform_indices = @transform_4, window_bounds = array<i64: 1, 32, 1>}, {transform_indices = @transform_5, window_bounds = array<i64: 1, 32, 1>}]} {
    %c0 = arith.constant 0 : index
    %c0_0 = arith.constant 0 : index
    %c0_1 = arith.constant 0 : index
    %0 = vector.load %arg1[%c0, %c0_0, %c0_1] : memref<1x32x200xf32, #tpu.memory_space<vmem>>, vector<1x32x200xf32>
    %1 = vector.shape_cast %0 : vector<1x32x200xf32> to vector<32x200xf32>
    %c0_2 = arith.constant 0 : index
    %c0_3 = arith.constant 0 : index
    %2 = vector.load %arg2[%c0_2, %c0_3] : memref<8x32xf32, #tpu.memory_space<vmem>>, vector<8x32xf32>
    %cst = arith.constant dense<0.000000e+00> : vector<32xf32>
    %3 = vector.multi_reduction <add>, %1, %cst [1] : vector<32x200xf32> to vector<32xf32>
    %4 = vector.shape_cast %3 : vector<32xf32> to vector<32x1xf32>
    %cst_4 = arith.constant dense<0.000000e+00> : vector<8x1xf32>
    %5 = tpu.matmul %2, %4, %cst_4 {dimension_numbers = #tpu.dot_dimension_numbers<[1], [0], [0], [1], [0, 0, 1, 1], [], []>} : vector<8x32xf32>, vector<32x1xf32>, vector<8x1xf32> -> vector<8x1xf32>
    %cst_5 = arith.constant 1.250000e-03 : f32
    %6 = vector.broadcast %cst_5 : f32 to vector<8x1xf32>
    %7 = arith.mulf %5, %6 : vector<8x1xf32>
    %8 = tpu.transpose %2, [1, 0] : vector<8x32xf32> -> vector<32x8xf32>
    %cst_6 = arith.constant dense<0.000000e+00> : vector<32x1xf32>
    %9 = tpu.matmul %8, %7, %cst_6 {dimension_numbers = #tpu.dot_dimension_numbers<[1], [0], [0], [1], [0, 0, 1, 1], [], []>} : vector<32x8xf32>, vector<8x1xf32>, vector<32x1xf32> -> vector<32x1xf32>
    %10 = vector.broadcast %9 : vector<32x1xf32> to vector<32x200xf32>
    %11 = arith.subf %1, %10 : vector<32x200xf32>
    %12 = arith.mulf %11, %11 : vector<32x200xf32>
    %cst_7 = arith.constant dense<0.000000e+00> : vector<32xf32>
    %13 = vector.multi_reduction <add>, %12, %cst_7 [1] : vector<32x200xf32> to vector<32xf32>
    %14 = vector.shape_cast %13 : vector<32xf32> to vector<32x1xf32>
    %cst_8 = arith.constant dense<0.000000e+00> : vector<8x1xf32>
    %15 = tpu.matmul %2, %14, %cst_8 {dimension_numbers = #tpu.dot_dimension_numbers<[1], [0], [0], [1], [0, 0, 1, 1], [], []>} : vector<8x32xf32>, vector<32x1xf32>, vector<8x1xf32> -> vector<8x1xf32>
    %cst_9 = arith.constant 1.250000e-03 : f32
    %16 = vector.broadcast %cst_9 : f32 to vector<8x1xf32>
    %17 = arith.mulf %15, %16 : vector<8x1xf32>
    %18 = tpu.transpose %2, [1, 0] : vector<8x32xf32> -> vector<32x8xf32>
    %cst_10 = arith.constant dense<0.000000e+00> : vector<32x1xf32>
    %19 = tpu.matmul %18, %17, %cst_10 {dimension_numbers = #tpu.dot_dimension_numbers<[1], [0], [0], [1], [0, 0, 1, 1], [], []>} : vector<32x8xf32>, vector<8x1xf32>, vector<32x1xf32> -> vector<32x1xf32>
    %cst_11 = arith.constant 9.99999997E-7 : f32
    %20 = vector.broadcast %cst_11 : f32 to vector<32x1xf32>
    %21 = arith.addf %19, %20 : vector<32x1xf32>
    %22 = math.rsqrt %21 : vector<32x1xf32>
    %c0_12 = arith.constant 0 : index
    %c0_13 = arith.constant 0 : index
    %23 = vector.load %arg3[%c0_12, %c0_13] : memref<32x1xf32, #tpu.memory_space<vmem>>, vector<32x1xf32>
    %24 = arith.mulf %23, %22 : vector<32x1xf32>
    %c0_14 = arith.constant 0 : index
    %c0_15 = arith.constant 0 : index
    %25 = vector.load %arg4[%c0_14, %c0_15] : memref<32x1xf32, #tpu.memory_space<vmem>>, vector<32x1xf32>
    %26 = arith.mulf %24, %9 : vector<32x1xf32>
    %27 = arith.subf %25, %26 : vector<32x1xf32>
    %c0_16 = arith.constant 0 : index
    %c0_17 = arith.constant 0 : index
    %c0_18 = arith.constant 0 : index
    %28 = vector.load %arg5[%c0_16, %c0_17, %c0_18] : memref<1x32x1xf32, #tpu.memory_space<vmem>>, vector<1x32x1xf32>
    %29 = vector.shape_cast %28 : vector<1x32x1xf32> to vector<32x1xf32>
    %30 = vector.shape_cast %24 : vector<32x1xf32> to vector<1x32x1xf32>
    tpu.vector_store %arg5[%c0_16, %c0_17, %c0_18], %30 {strides = array<i32>} : memref<1x32x1xf32, #tpu.memory_space<vmem>>, vector<1x32x1xf32>,
    %c0_19 = arith.constant 0 : index
    %c0_20 = arith.constant 0 : index
    %c0_21 = arith.constant 0 : index
    %31 = vector.load %arg6[%c0_19, %c0_20, %c0_21] : memref<1x32x1xf32, #tpu.memory_space<vmem>>, vector<1x32x1xf32>
    %32 = vector.shape_cast %31 : vector<1x32x1xf32> to vector<32x1xf32>
    %33 = vector.shape_cast %27 : vector<32x1xf32> to vector<1x32x1xf32>
    tpu.vector_store %arg6[%c0_19, %c0_20, %c0_21], %33 {strides = array<i32>} : memref<1x32x1xf32, #tpu.memory_space<vmem>>, vector<1x32x1xf32>,
    return
  }
  func.func @transform_0(%arg0: i32) -> (i32, i32, i32) {
    %c0_i32 = arith.constant 0 : i32
    %c0_i32_0 = arith.constant 0 : i32
    %c0_i32_1 = arith.constant 0 : i32
    return %arg0, %c0_i32, %c0_i32_0 : i32, i32, i32
  }
  func.func @transform_1(%arg0: i32) -> (i32, i32) {
    %c0_i32 = arith.constant 0 : i32
    %c0_i32_0 = arith.constant 0 : i32
    %c0_i32_1 = arith.constant 0 : i32
    return %c0_i32, %c0_i32_0 : i32, i32
  }
  func.func @transform_2(%arg0: i32) -> (i32, i32) {
    %c0_i32 = arith.constant 0 : i32
    %c0_i32_0 = arith.constant 0 : i32
    %c0_i32_1 = arith.constant 0 : i32
    return %c0_i32, %c0_i32_0 : i32, i32
  }
  func.func @transform_3(%arg0: i32) -> (i32, i32) {
    %c0_i32 = arith.constant 0 : i32
    %c0_i32_0 = arith.constant 0 : i32
    %c0_i32_1 = arith.constant 0 : i32
    return %c0_i32, %c0_i32_0 : i32, i32
  }
  func.func @transform_4(%arg0: i32) -> (i32, i32, i32) {
    %c0_i32 = arith.constant 0 : i32
    %c0_i32_0 = arith.constant 0 : i32
    %c0_i32_1 = arith.constant 0 : i32
    return %arg0, %c0_i32, %c0_i32_0 : i32, i32, i32
  }
  func.func @transform_5(%arg0: i32) -> (i32, i32, i32) {
    %c0_i32 = arith.constant 0 : i32
    %c0_i32_0 = arith.constant 0 : i32
    %c0_i32_1 = arith.constant 0 : i32
    return %arg0, %c0_i32, %c0_i32_0 : i32, i32, i32
  }
}

</mosaic_0001>

<bundles_post_ra>
// kernel: tpu_custom_call.1
= control target key start
LH: loop header
LB: loop body
LE: loop exit
PB: predicated region body
PF: predicated region fallthrough
CT: control target
= control target key end

     0   :  { %11 = vsyncpa [#allocation3], 0  ;;  %s1306_s0 = inlined_call_operand.hbm [shape: f32[2,32,200], index: 0, kind: input, shape index: {}]   ;;  %s1307_s1 = inlined_call_operand.vmem [shape: f32[8,32], index: 1, kind: input, shape index: {}]   ;;  %s1308_s2 = inlined_call_operand.vmem [shape: f32[32,1], index: 2, kind: input, shape index: {}]   ;;  %s1309_s3 = inlined_call_operand.vmem [shape: f32[32,1], index: 3, kind: input, shape index: {}]   ;;  %s1310_s4 = inlined_call_operand.vmem [shape: f32[2,32,1], index: 4, kind: output, shape index: {0}]   ;;  %s1311_s5 = inlined_call_operand.vmem [shape: f32[2,32,1], index: 5, kind: output, shape index: {1}]  }
   0x1   :  { %13 = vsyncpa [#allocation3 + $0x1], 0  ;;  %s1087_s18 = smov 0   ;;  %s1089_s19 = smov 0  }
   0x2   :  { %s1091_s20 = smov 0   ;;  %s1093_s21 = smov 0  }
   0x3 LB: > { %s1106_s22 = sadd.s32 4294967295, %s1048_s21   ;;  %s1109_s23 = sadd.s32 1, %s1048_s21   ;;  %s1048_s21 = sphi %s1093_s21, %s1318_s21   ;;  %s1044_s20 = sphi %s1091_s20, %s1317_s20   ;;  %s1040_s19 = sphi %s1089_s19, %s1316_s19   ;;  %s1036_s18 = sphi %s1087_s18, %s1315_s18  }
   0x4   : > { %s23_s24 = ssub.s32 %s1048_s21, %s1109_s23  ;;  %s26_s25 = sadd.s32 1, %s1044_s20 }
   0x5   : > { %p24_p0 = scmp.eq.s32.totalorder %s23_s24, 0  ;;  %p33_p1 = scmp.ne.s32.totalorder %s1044_s20, %s1040_s19 }
   0x6   : > { %p34_p2 = scmp.eq.s32.totalorder %s1048_s21, 0  ;;  %p39_p3 = scmp.ne.s32.totalorder %s1040_s19, %s1036_s18 }
   0x7   : > { %s1119_s26 = scalar_select %p24_p0, %s1044_s20, %s26_s25  }
   0x8   : > { %p35_p4 = por %p34_p2, %p33_p1  ;;  %p40_p5 = scmp.eq.s32.totalorder %s1106_s22, 0 }
   0x9   : > { %p935_p6 = scmp.lt.s32.totalorder %s1048_s21, 2  ;;  %s187_s28 = sand.u32 1, %s1044_s20  }
   0xa   : > { %p1123_p7 = por %p40_p5, %p39_p3  ;;  %s833_s29 = sshll.u32 %s187_s28, 6 }
   0xb   : > { %s854_s30 = sshll.u32 %s1048_s21, 10  ;;  %s191_s9 = scalar_lea.vmem [#allocation2], %s833_s29 }
   0xc   : > { %s1132_s8 = scalar_lea.hbm %s1306_s0, %s854_s30  ;;  %s198_s10 = sshll.u32 %s191_s9, 4  ;;  %s1134_s10 = int_to_ptr.vmem [resolvable:$true] %s198_s10 }
   0xd   : > { %p1136_p8 = pnand %p935_p6, %p35_p4  ;;  %s1141_s12 = scalar_lea.sflag [#allocation3], %s187_s28 }
   0xe   : > { %s984_s13 = scalar_lea.hbm %s1132_s8, 1024  ;;  %s989_s16 = scalar_lea.hbm %s1306_s0, 2048 }
   0xf   : > { %p985_p10 = scmp.ne.s32.totalorder %s1132_s8, %s984_s13  ;;  %p986_p11 = pneg %p1136_p8 }
  0x10   : > { %p990_p0 = scmp.lt.u32.totalorder %s1132_s8, %s1306_s0  ;;  %p991_p1 = scmp.lt.u32.totalorder %s989_s16, %s984_s13 }
  0x11   : > { %p987_p12 = pnand %p986_p11, %p985_p10  ;;  %p993_p3 = scmp.lt.u32.totalorder %s984_s13, %s1132_s8 }
  0x12   : > { %p992_p2 = por %p991_p1, %p990_p0 }
  0x13   : > { %p988_p13 = pneg %p987_p12 }
  0x14   : > { %p994_p4 = por %p993_p3, %p992_p2 }
  0x16   : > { %p995_p5 = pnand %p994_p4, %p988_p13 }
  0x18   : > { %998 = shalt.err (!%p995_p5)
}
  0x19   : > { %s999_s24 = scalar_lea.vmem %s1134_s10, 1024  ;;  %s1050_s25 = smov [#allocation2]  }
  0x1a   : > { %p1000_p6 = scmp.ne.s32.totalorder %s1134_s10, %s999_s24  ;;  %s1004_s28 = sshll.u32 %s1050_s25, 4  ;;  %s1005_s28 = int_to_ptr.vmem [resolvable:$false] %s1004_s28 }
  0x1b   : > { %s1006_s29 = scalar_lea.vmem %s1005_s28, 2048  ;;  %p1007_p9 = scmp.lt.s32.totalorder %s1134_s10, %s1005_s28 }
  0x1c   : > { %p1002_p10 = pnand %p1000_p6, %p986_p11  ;;  %p1008_p0 = scmp.lt.s32.totalorder %s1006_s29, %s999_s24 }
  0x1e   : > { %p1003_p12 = pneg %p1002_p10  ;;  %p1009_p1 = por %p1008_p0, %p1007_p9 }
  0x20   : > { %p1010_p2 = pnand %p1009_p1, %p1003_p12 }
  0x22   : > { %1013 = shalt.err (!%p1010_p2)
}
  0x23   : > { %s1051_s30 = smov 256   ;;  %s1052_s6 = smov 16  }
  0x24   : > { %934 = dma.hbm_to_vmem [thread:$0]  (!%p1136_p8), %s1132_s8, 1024, %s1134_s10, %s1141_s12, %s1051_s30, %s1051_s30, %s1052_s6  }
  0x25   : > { %p206_p11 = scmp.lt.s32.totalorder %s1048_s21, 3  ;;  %p1314_p13 = scmp.ge.s32.totalorder %s1048_s21, 1 }
  0x27   : > { %p207_p3 = pnand %p1314_p13, %p206_p11 }
  0x28   : > { %s212_s7 = sand.u32 (!%p207_p3), 1, %s1040_s19  }
  0x29   : > { %210 = sbr.rel (%p207_p3) target bundleno = 1382 (0x566), region = 36  ;;  %s837_s9 = sshll.u32 (!%p207_p3), %s212_s7, 6 }
  0x2a   : > { %s213_s13 = scalar_lea.sflag (!%p207_p3), [#allocation3], %s212_s7  ;;  %s216_s14 = scalar_lea.vmem (!%p207_p3), [#allocation2], %s837_s9 }
  0x30   : > { %1031 = dma.done.wait (%p1123_p7), %s213_s13, 1024  }
  0x31   : > { %1033 = vsyncadd (%p1123_p7), %s213_s13, 4294966272  ;;  %vm267_vm0 = vcmask 588800   ;;  %v1177_v0 = vld [vmem:[%s216_s14 + $0x20] sm:$0xff]  ;;  %v1179_v1 = vld [vmem:[%s216_s14 + $0x28] sm:$0xff]  ;;  %v1053_v16 = vmov 0.0|0.0   ;;  %vm1054_vm1 = vmmov 0  }
  0x32   : > { %v1181_v2 = vld [vmem:[%s216_s14] sm:$0xff]  ;;  %v276_v3 = vsel %vm267_vm0, %v1179_v1, 0.0  ;;  %v1185_v4 = vld [vmem:[%s216_s14 + $0x8] sm:$0xff]  ;;  %v1187_v5 = vld [vmem:[%s216_s14 + $0x30] sm:$0xff]  ;;  %915 = vmatprep.subr.bf16.mxu0 %v1053_v16  ;;  %v1055_v17 = vmov 0.0   ;;  %vm284_vm2 = vcmask 261120  }
  0x33   : > { %v1189_v6 = vld [vmem:[%s216_s14 + $0x38] sm:$0xff]  ;;  %v277_v7 = vadd.f32 %v276_v3, %v1177_v0  ;;  %v268_v8 = vsel %vm267_vm0, %v1185_v4, 0.0  ;;  %v260_v10 = vld [vmem:[%s216_s14 + $0x10] sm:$0xff]  ;;  %885 = vmatprep.mubr.msk.f32.mxu0 %vm1054_vm1, %v1055_v17  ;;  %v1204_v18 = vld [vmem:[%s1307_s1] sm:$0xff]  ;;  %vm391_vm3 = vcmask 64512   ;;  %v1056_v26 = vmov 0  }
  0x34   : > { %v280_v9 = vsel %vm267_vm0, %v1189_v6, 0.0  ;;  %v261_v11 = vld [vmem:[%s216_s14 + $0x18] sm:$0xff]  ;;  %v269_v12 = vadd.f32 %v268_v8, %v1181_v2  ;;  %974 = vset.pattern.permute.xlu1 %v1056_v26  ;;  %p248_p7 = scmp.lt.s32.totalorder %s1106_s22, 1  ;;  %vm721_vm4 = vcmask 7168  }
  0x35   : > { %v272_v13 = vsel %vm267_vm0, %v261_v11, 0.0  ;;  %278 = vadd.xlane.f32.xlu1 %v277_v7  ;;  %v281_v14 = vadd.f32 %v280_v9, %v1187_v5 }
  0x36   : > { %270 = vadd.xlane.f32.xlu0 %v269_v12  ;;  %v273_v15 = vadd.f32 %v272_v13, %v260_v10  ;;  %s1320_s22 = smov (!%p248_p7, %s1106_s22), 1 }
  0x37   : > { %s855_s8 = sshll.u32 %s1320_s22, 5 }
  0x38   : > { %s252_s18 = scalar_lea.vmem %s1310_s4, %s855_s8  ;;  %s257_s14 = scalar_lea.vmem %s1311_s5, %s855_s8 }
  0x39   : > { %282 = vadd.xlane.f32.xlu1 %v281_v14 }
  0x3a   : > { %274 = vadd.xlane.f32.xlu0 %v273_v15 }
  0x67   : > { %359 = vxpose.xlu0.b32.start.end [1/1] (short) (narrow) %v1204_v18, 32 }
  0x90   : > { %975 = vset.pattern.permute.xlu0 %v1056_v26  ;;  %v710_v26 = vld [vmem:[%s1309_s3 + $0x8] sm:$0xff] }
  0xc2   : > { %v279_v19 = vpop.xlane.xlu1 %278 }
  0xc3   : > { %v271_v20 = vpop.xlane.xlu0 %270 }
  0xc6   : > { %v283_v23 = vpop.xlane.xlu1 %282 }
  0xc7   : > { %v275_v21 = vpop.xlane.xlu0 %274  ;;  %v919_v24 = vpack.c.bf16 %v283_v23, %v279_v19  ;;  %v704_v19 = vld [vmem:[%s1308_s2 + $0x18] sm:$0xff] }
  0xc8   : > { %v916_v22 = vpack.c.bf16 %v275_v21, %v271_v20  ;;  %v701_v21 = vld [vmem:[%s1308_s2] sm:$0xff] }
  0xca   : > { %917 = vmatpush3.bf16.msra.mxu0 %v916_v22 }
  0xcb   : > { %918 = vmatprep.subr.bf16.mxu0 %v1053_v16 }
  0xce   : > { %920 = vmatpush3.bf16.msra.mxu0 %v919_v24  ;;  %v703_v24 = vld [vmem:[%s1308_s2 + $0x10] sm:$0xff] }
  0xd1   : > { %886 = vmatmul.mubr.msk.f32.vlgmr.msra.gmra.mrb[0].mxu0 %vm284_vm2, %v1204_v18 }
  0xe7   : > { %v375_v25 = vpop.trf.xlu0 }
  0xe8   : > { %890 = vmatprep.mubr.msk.f32.mxu1 %vm391_vm3, %v375_v25  ;;  %909 = vmatprep.mubr.msk.f32.mxu0 %vm391_vm3, %v375_v25 }
  0xeb   : > { %v1212_v27 = vpop.trf.xlu0 }
  0xef   : > { %v377_v29 = vpop.trf.xlu0 }
  0xf3   : > { %v378_v32 = vpop.trf.xlu0 }
 0x1a4   : > { %v354_v28 = vpop.f32.mrb[0].mxu0 }
 0x1a5   : > { %v358_v30 = vmul.f32 0.00125, %v354_v28  ;;  %v887_v31 = vpop.f32.mrb[1].mxu0 }
 0x1a7   : > { %888 = vmatprep.subr.mxu1 %v358_v30 }
 0x1a8   : > { %889 = vmatpush3.msra.mxu1 %v358_v30  ;;  %v712_v30 = vld [vmem:[%s1309_s3 + $0x18] sm:$0xff] }
 0x1a9   : > { %891 = vmatmul.mubr.msk.f32.vlgmr.msra.gmra.mrb[0].mxu1 %vm391_vm3, %v1212_v27  ;;  %921 = vmatprep.subr.bf16.mxu1 %v1053_v16 }
 0x1aa   : > { %893 = vmatprep.mubr.msk.f32.mxu1 %vm391_vm3, %v377_v29 }
 0x1ad   : > { %894 = vmatmul.mubr.msk.f32.gmra.mrb[2].mxu1 %vm391_vm3, %v378_v32 }
 0x1ae   : > { %904 = vmatprep.mubr.msk.f32.mxu1 %vm1054_vm1, %v1055_v17 }
 0x27c   : > { %v1220_v33 = vpop.f32.mrb[0].mxu1 }
 0x27d   : > { %496 = vperm.xlu1 %974, %v1220_v33   ;;  %v1223_v34 = vpop.f32.mrb[1].mxu1 }
 0x280   : > { %v1225_v35 = vpop.f32.mrb[2].mxu1 }
 0x281   : > { %491 = vperm.xlu1 %974, %v1223_v34   ;;  %v1228_v36 = vpop.f32.mrb[3].mxu1 }
 0x285   : > { %501 = vperm.xlu1 %974, %v1228_v36  }
 0x289   : > { %506 = vperm.xlu1 %974, %v1225_v35  }
 0x2fc   : > { %v497_v37 = vpop.permute.xlu1 %496 }
 0x2fd   : > { %v511_v38 = vsub.f32 %v260_v10, %v497_v37  ;;  %v512_v39 = vsub.f32 %v261_v11, %v497_v37  ;;  %v709_v37 = vld [vmem:[%s1309_s3] sm:$0xff] }
 0x2ff   : > { %v519_v40 = vmul.f32 %v511_v38, %v511_v38  ;;  %v520_v41 = vmul.f32 %v512_v39, %v512_v39 }
 0x300   : > { %v492_v42 = vpop.permute.xlu1 %491 }
 0x301   : > { %v509_v43 = vsub.f32 %v1181_v2, %v492_v42  ;;  %v510_v44 = vsub.f32 %v1185_v4, %v492_v42  ;;  %v529_v45 = vsel %vm267_vm0, %v520_v41, 0.0 }
 0x302   : > { %v530_v46 = vadd.f32 %v529_v45, %v519_v40  ;;  %v711_v40 = vld [vmem:[%s1309_s3 + $0x10] sm:$0xff] }
 0x303   : > { %v517_v47 = vmul.f32 %v509_v43, %v509_v43  ;;  %v518_v48 = vmul.f32 %v510_v44, %v510_v44 }
 0x304   : > { %531 = vadd.xlane.f32.xlu0 %v530_v46  ;;  %v502_v49 = vpop.permute.xlu1 %501 }
 0x305   : > { %v513_v50 = vsub.f32 %v1177_v0, %v502_v49  ;;  %v514_v51 = vsub.f32 %v1179_v1, %v502_v49  ;;  %v525_v52 = vsel %vm267_vm0, %v518_v48, 0.0 }
 0x306   : > { %v526_v53 = vadd.f32 %v525_v52, %v517_v47 }
 0x307   : > { %v521_v54 = vmul.f32 %v513_v50, %v513_v50  ;;  %v522_v55 = vmul.f32 %v514_v51, %v514_v51 }
 0x308   : > { %527 = vadd.xlane.f32.xlu1 %v526_v53  ;;  %v507_v56 = vpop.permute.xlu1 %506 }
 0x309   : > { %v515_v57 = vsub.f32 %v1187_v5, %v507_v56  ;;  %v516_v58 = vsub.f32 %v1189_v6, %v507_v56  ;;  %v533_v59 = vsel %vm267_vm0, %v522_v55, 0.0 }
 0x30a   : > { %v534_v60 = vadd.f32 %v533_v59, %v521_v54 }
 0x30b   : > { %v523_v61 = vmul.f32 %v515_v57, %v515_v57  ;;  %v524_v62 = vmul.f32 %v516_v58, %v516_v58 }
 0x30c   : > { %535 = vadd.xlane.f32.xlu1 %v534_v60 }
 0x30d   : > { %v537_v63 = vsel %vm267_vm0, %v524_v62, 0.0 }
 0x30e   : > { %v538_v0 = vadd.f32 %v537_v63, %v523_v61 }
 0x310   : > { %539 = vadd.xlane.f32.xlu1 %v538_v0 }
 0x391   : > { %v532_v1 = vpop.xlane.xlu0 %531 }
 0x395   : > { %v528_v2 = vpop.xlane.xlu1 %527 }
 0x396   : > { %v922_v3 = vpack.c.bf16 %v532_v1, %v528_v2 }
 0x398   : > { %923 = vmatpush3.bf16.msra.mxu1 %v922_v3 }
 0x399   : > { %v536_v4 = vpop.xlane.xlu1 %535  ;;  %924 = vmatprep.subr.bf16.mxu1 %v1053_v16 }
 0x39d   : > { %v540_v5 = vpop.xlane.xlu1 %539 }
 0x39e   : > { %v925_v7 = vpack.c.bf16 %v540_v5, %v536_v4 }
 0x3a0   : > { %926 = vmatpush3.bf16.msra.mxu1 %v925_v7 }
 0x3a3   : > { %905 = vmatmul.mubr.msk.f32.vlgmr.msra.gmra.mrb[4].mxu1 %vm284_vm2, %v1204_v18  ;;  %v702_v18 = vld [vmem:[%s1308_s2 + $0x8] sm:$0xff] }
 0x3a4   : > { %912 = vmatprep.mubr.msk.f32.mxu1 %vm391_vm3, %v377_v29 }
 0x476   : > { %v607_v6 = vpop.f32.mrb[4].mxu1 }
 0x477   : > { %v611_v8 = vmul.f32 0.00125, %v607_v6  ;;  %v906_v9 = vpop.f32.mrb[5].mxu1 }
 0x479   : > { %907 = vmatprep.subr.mxu0 %v611_v8  ;;  %927 = vmatprep.subr.mxu1 %v611_v8 }
 0x47a   : > { %908 = vmatpush3.msra.mxu0 %v611_v8  ;;  %928 = vmatpush3.msra.mxu1 %v611_v8 }
 0x47b   : > { %910 = vmatmul.mubr.msk.f32.vlgmr.msra.gmra.mrb[2].mxu0 %vm391_vm3, %v1212_v27  ;;  %913 = vmatmul.mubr.msk.f32.vlgmr.msra.gmra.mrb[6].mxu1 %vm391_vm3, %v378_v32 }
 0x54e   : > { %v911_v10 = vpop.f32.mrb[2].mxu0  ;;  %v914_v11 = vpop.f32.mrb[6].mxu1 }
 0x54f   : > { %v684_v12 = vadd.f32 1e-06, %v911_v10  ;;  %v694_v13 = vadd.f32 1e-06, %v914_v11  ;;  %v678_v14 = vpop.f32.mrb[3].mxu0  ;;  %v688_v15 = vpop.f32.mrb[7].mxu1 }
 0x550   : > { %v679_v16 = vadd.f32 1e-06, %v678_v14  ;;  %v689_v17 = vadd.f32 1e-06, %v688_v15 }
 0x551   : > { %976 = vrsqrt.f32 %v684_v12 }
 0x552   : > { %978 = vrsqrt.f32 %v694_v13 }
 0x553   : > { %980 = vrsqrt.f32 %v679_v16 }
 0x554   : > { %982 = vrsqrt.f32 %v689_v17 }
 0x55b   : > { %v977_v20 = vpop.eup %976 }
 0x55c   : > { %v979_v22 = vpop.eup %978  ;;  %v706_v23 = vmul.f32 %v977_v20, %v702_v18 }
 0x55d   : > { %v981_v25 = vpop.eup %980  ;;  %v708_v27 = vmul.f32 %v979_v22, %v704_v19 }
 0x55e   : > { %v983_v28 = vpop.eup %982  ;;  %v714_v29 = vmul.f32 %v1220_v33, %v706_v23  ;;  %723 = vst.msk [vmem:[%s252_s18 + $0x8] sm:$0xff] %vm721_vm4, %v706_v23  ;;  %v705_v31 = vmul.f32 %v981_v25, %v701_v21 }
 0x55f   : > { %v716_v32 = vmul.f32 %v1225_v35, %v708_v27  ;;  %725 = vst.msk [vmem:[%s252_s18 + $0x18] sm:$0xff] %vm721_vm4, %v708_v27  ;;  %v707_v33 = vmul.f32 %v983_v28, %v703_v24 }
 0x560   : > { %v718_v38 = vsub.f32 %v710_v26, %v714_v29  ;;  %v713_v39 = vmul.f32 %v705_v31, %v1223_v34  ;;  %722 = vst.msk [vmem:[%s252_s18] sm:$0xff] %vm721_vm4, %v705_v31 }
 0x561   : > { %v720_v41 = vsub.f32 %v712_v30, %v716_v32  ;;  %v715_v42 = vmul.f32 %v707_v33, %v1228_v36  ;;  %724 = vst.msk [vmem:[%s252_s18 + $0x10] sm:$0xff] %vm721_vm4, %v707_v33 }
 0x562   : > { %727 = vst.msk [vmem:[%s257_s14 + $0x8] sm:$0xff] %vm721_vm4, %v718_v38  ;;  %v717_v35 = vsub.f32 %v709_v37, %v713_v39 }
 0x563   : > { %729 = vst.msk [vmem:[%s257_s14 + $0x18] sm:$0xff] %vm721_vm4, %v720_v41  ;;  %v719_v43 = vsub.f32 %v711_v40, %v715_v42 }
 0x564   : > { %726 = vst.msk [vmem:[%s257_s14] sm:$0xff] %vm721_vm4, %v717_v35 }
 0x565   : > { %728 = vst.msk [vmem:[%s257_s14 + $0x10] sm:$0xff] %vm721_vm4, %v719_v43 }
 0x566 PF: > { %p16_p8 = scmp.ge.s32.totalorder %s1109_s23, 4   ;;  %s1315_s18 = smov %s1040_s19 }
 0x567   : > { %s1316_s19 = smov %s1044_s20  ;;  %s1317_s20 = smov %s1119_s26 }
 0x568   : > { %s1318_s21 = smov %s1109_s23  ;;  %18 = sbr.rel (!%p16_p8) target bundleno = 3 (0x3), region = 88 }
 0x56f   :  { %767 = vsyncpa [#allocation3], 1 }
 0x570   :  { %769 = vsyncpa [#allocation3 + $0x1], 1 }

</bundles_post_ra>
